<compile_context>
chip_gen: v6e
topology: v6e:2x2x1
jax: 0.10.0
libtpu: 0.0.40
codegen_flags: <defaults>
</compile_context>

<pallas_src>
import functools

import jax
import jax.numpy as jnp
from jax.experimental import pallas as pl
from jax.experimental.pallas import tpu as pltpu


ACT_DTYPE = jnp.bfloat16            # inter-kernel activation / MXU input dtype
VMEM_LIMIT = 32 * 1024 * 1024       # legal on v5e/v6e (128 MiB) and v7x (64 MiB)


# ----------------------------------------------------------------------------
# In-kernel GroupNorm finalize (shared GEMM epilogue)
# ----------------------------------------------------------------------------

def _gn_finalize(acc, gamma, beta, member, mt, res, *, eps, relu, inv_count):
    """GroupNorm + affine + optional residual-add / ReLU on an (M, C) f32 slab.

    Group statistics use a tiny one-hot (C, G) matmul; `member is None` means
    groups == C (per-channel stats, e.g. gn_proj = GroupNorm(cout, cout)).
    Variance is two-pass (no E[x^2]-E[x]^2 cancellation).
    """
    s_c = jnp.sum(acc, axis=0, keepdims=True)                       # (1, C)
    if member is None:
        mean_c = s_c * inv_count
    else:
        mean_g = jnp.dot(s_c, member, preferred_element_type=jnp.float32) * inv_count
        mean_c = jnp.dot(mean_g, mt, preferred_element_type=jnp.float32)
    d = acc - mean_c
    ss_c = jnp.sum(d * d, axis=0, keepdims=True)                    # (1, C)
    if member is None:
        inv_c = jax.lax.rsqrt(ss_c * inv_count + eps)
    else:
        var_g = jnp.dot(ss_c, member, preferred_element_type=jnp.float32) * inv_count
        inv_c = jnp.dot(jax.lax.rsqrt(var_g + eps), mt,
                        preferred_element_type=jnp.float32)
    y = d * inv_c * gamma + beta
    if res is not None:
        y = y + res
    if relu:
        y = jnp.maximum(y, 0.0)
    return y


# ----------------------------------------------------------------------------
# Fused kernels
# ----------------------------------------------------------------------------

def _mm_gn_kernel(*refs, eps, relu, inv_count, use_member, has_residual):
    """Fused 1x1 StdConv (channel GEMM) + GroupNorm (+ residual + ReLU).

    refs = x (1, M, Cin) bf16, w (Cin, Cout) bf16, gamma (1, Cout) f32,
           beta (1, Cout) f32, [member (Cout, G), mt (G, Cout)],
           [res (1, M, Cout) bf16], out (1, M, Cout) bf16
    """
    x_ref, w_ref, g_ref, b_ref = refs[:4]
    i = 4
    member = mt = None
    if use_member:
        member, mt = refs[i][...], refs[i + 1][...]
        i += 2
    res = None
    if has_residual:
        res = refs[i][0].astype(jnp.float32)
        i += 1
    o_ref = refs[i]

    acc = jnp.dot(x_ref[0], w_ref[...], preferred_element_type=jnp.float32)
    y = _gn_finalize(acc, g_ref[...], b_ref[...], member, mt, res,
                     eps=eps, relu=relu, inv_count=inv_count)
    o_ref[0] = y.astype(o_ref.dtype)


def _conv_gn_kernel(*refs, taps, ho, wo, eps, relu, inv_count, use_member):
    """Fused kxk StdConv (tap-accumulated GEMM, no im2col) + GroupNorm + ReLU.

    refs = planes (1, P*hp, wp, Cin) bf16, w (k*k, Cin, Cout) bf16,
           gamma (1, Cout) f32, beta (1, Cout) f32, [member, mt],
           out (1, ho*wo, Cout) bf16
    Each tap reads a contiguous (ho, wo, Cin) window of one stride-parity
    plane (static offsets): the padded activation is read once from HBM and
    no 9x im2col buffer or strided vector load is ever created.
    """
    x_ref, w_ref, g_ref, b_ref = refs[:4]
    i = 4
    member = mt = None
    if use_member:
        member, mt = refs[i][...], refs[i + 1][...]
        i += 2
    o_ref = refs[i]

    cin = w_ref.shape[1]
    # Upcast the block once; f32 windows keep the (ho, wo, Cin) -> (ho*wo, Cin)
    # sublane merge layout-aligned (wo is a multiple of 8 here).
    x = x_ref[0].astype(jnp.float32)                     # (P*hp, wp, Cin)
    acc = None
    for t, (r0, c0) in enumerate(taps):
        win = x[r0:r0 + ho, c0:c0 + wo, :]
        a = win.reshape(ho * wo, cin).astype(ACT_DTYPE)
        part = jnp.dot(a, w_ref[t], preferred_element_type=jnp.float32)
        acc = part if acc is None else acc + part
    y = _gn_finalize(acc, g_ref[...], b_ref[...], member, mt, None,
                     eps=eps, relu=relu, inv_count=inv_count)
    o_ref[0] = y.astype(o_ref.dtype)


def _wstd_kernel(w_ref, o_ref, *, eps):
    """Weight standardization: per-Cout-row mean/var over (Cin*kh*kw)."""
    w = w_ref[...]
    mean = jnp.mean(w, axis=-1, keepdims=True)
    d = w - mean
    var = jnp.mean(d * d, axis=-1, keepdims=True)        # two-pass variance
    o_ref[...] = d * jax.lax.rsqrt(var + eps)


# ----------------------------------------------------------------------------
# pallas_call wrappers
# ----------------------------------------------------------------------------

def wstd_pallas(w_flat, eps=1e-5):
    """Standardize conv-weight rows (hoisted: runs once per weight)."""
    r, l = w_flat.shape
    return pl.pallas_call(
        functools.partial(_wstd_kernel, eps=eps),
        out_shape=jax.ShapeDtypeStruct((r, l), jnp.float32),
        grid=(1,),
        in_specs=[pl.BlockSpec((r, l), lambda i: (0, 0))],
        out_specs=pl.BlockSpec((r, l), lambda i: (0, 0)),
        compiler_params=pltpu.CompilerParams(vmem_limit_bytes=VMEM_LIMIT),
    )(w_flat.astype(jnp.float32))


def _gn_operands(cout, groups, gamma, beta):
    """Gamma/beta as (1, C) vectors + optional one-hot group membership."""
    gs = cout // groups
    args = [gamma.reshape(1, cout).astype(jnp.float32),
            beta.reshape(1, cout).astype(jnp.float32)]
    specs = [pl.BlockSpec((1, cout), lambda n: (0, 0)),
             pl.BlockSpec((1, cout), lambda n: (0, 0))]
    use_member = groups != cout
    if use_member:
        member = jnp.repeat(jnp.eye(groups, dtype=jnp.float32), gs, axis=0)
        args += [member, member.T]
        specs += [pl.BlockSpec((cout, groups), lambda n: (0, 0)),
                  pl.BlockSpec((groups, cout), lambda n: (0, 0))]
    return args, specs, use_member, gs


def conv1x1_gn(x, w, gamma, beta, *, groups, eps, relu, residual=None):
    """Fused 1x1 StdConv + GroupNorm (+ residual + ReLU).

    x: (N, H*W, Cin) bf16 rows, w: (Cin, Cout) bf16 -> (N, H*W, Cout) bf16.
    """
    n, m, cin = x.shape
    cout = w.shape[1]
    gn_args, gn_specs, use_member, gs = _gn_operands(cout, groups, gamma, beta)

    args = [x, w] + gn_args
    in_specs = [pl.BlockSpec((1, m, cin), lambda i: (i, 0, 0)),
                pl.BlockSpec((cin, cout), lambda i: (0, 0))] + gn_specs
    has_res = residual is not None
    if has_res:
        args.append(residual.astype(ACT_DTYPE))
        in_specs.append(pl.BlockSpec((1, m, cout), lambda i: (i, 0, 0)))

    kernel = functools.partial(
        _mm_gn_kernel, eps=eps, relu=relu, inv_count=1.0 / float(m * gs),
        use_member=use_member, has_residual=has_res)
    return pl.pallas_call(
        kernel,
        out_shape=jax.ShapeDtypeStruct((n, m, cout), ACT_DTYPE),
        grid=(n,),
        in_specs=in_specs,
        out_specs=pl.BlockSpec((1, m, cout), lambda i: (i, 0, 0)),
        compiler_params=pltpu.CompilerParams(
            dimension_semantics=("parallel",),
            vmem_limit_bytes=VMEM_LIMIT),
    )(*args)


def _make_planes(x_nhwc, k, stride, padding):
    """Zero-pad and decompose NHWC input into stride-parity planes (one cheap
    XLA pass; identity apart from the pad when stride == 1).

    Returns (planes (N, P*hp, wp, C), taps (static (row0, col0) per conv tap),
    hp, wp, ho, wo).  Each tap then reads a contiguous (ho, wo, C) window of
    exactly one plane inside the kernel (no strided loads, no im2col).
    """
    n, h, w, c = x_nhwc.shape
    s = stride
    xp = x_nhwc
    if padding:
        xp = jnp.pad(xp, ((0, 0), (padding, padding), (padding, padding), (0, 0)))
    hpad, wpad = h + 2 * padding, w + 2 * padding
    ho = (hpad - k) // s + 1
    wo = (wpad - k) // s + 1
    if s == 1:
        taps = tuple((di, dj) for di in range(k) for dj in range(k))
        return xp, taps, hpad, wpad, ho, wo
    hp, wp = -(-hpad // s), -(-wpad // s)
    xp = jnp.pad(xp, ((0, 0), (0, hp * s - hpad), (0, wp * s - wpad), (0, 0)))
    planes = xp.reshape(n, hp, s, wp, s, c).transpose(0, 2, 4, 1, 3, 5)
    planes = planes.reshape(n, s * s * hp, wp, c)
    taps = tuple((((di % s) * s + dj % s) * hp + di // s, dj // s)
                 for di in range(k) for dj in range(k))
    return planes, taps, hp, wp, ho, wo


def conv3x3_gn(x, w_taps, gamma, beta, *, h, w, stride, padding, groups,
               eps, relu):
    """Fused kxk StdConv + GroupNorm + ReLU, no materialized im2col.

    x: (N, H*W, Cin) bf16 rows, w_taps: (k*k, Cin, Cout) bf16.
    Returns ((N, Ho*Wo, Cout) bf16, Ho, Wo).
    """
    n, m, cin = x.shape
    assert m == h * w
    k2, _, cout = w_taps.shape
    k = int(round(k2 ** 0.5))
    planes, taps, hp, wp, ho, wo = _make_planes(
        x.reshape(n, h, w, cin), k=k, stride=stride, padding=padding)
    # TODO(synk): add a tap-materialized fallback for wo % 8 != 0.
    assert wo % 8 == 0, "output width must be a multiple of 8 for the merge"
    rows = planes.shape[1]
    gn_args, gn_specs, use_member, gs = _gn_operands(cout, groups, gamma, beta)

    args = [planes, w_taps] + gn_args
    in_specs = [pl.BlockSpec((1, rows, wp, cin), lambda i: (i, 0, 0, 0)),
                pl.BlockSpec((k * k, cin, cout), lambda i: (0, 0, 0))] + gn_specs

    kernel = functools.partial(
        _conv_gn_kernel, taps=taps, ho=ho, wo=wo, eps=eps, relu=relu,
        inv_count=1.0 / float(ho * wo * gs), use_member=use_member)
    out = pl.pallas_call(
        kernel,
        out_shape=jax.ShapeDtypeStruct((n, ho * wo, cout), ACT_DTYPE),
        grid=(n,),
        in_specs=in_specs,
        out_specs=pl.BlockSpec((1, ho * wo, cout), lambda i: (i, 0, 0)),
        compiler_params=pltpu.CompilerParams(
            dimension_semantics=("parallel",),
            vmem_limit_bytes=VMEM_LIMIT),
    )(*args)
    return out, ho, wo


# ----------------------------------------------------------------------------
# StdConv2d weight preparation (hoisted: standardize once, store GEMM-ready)
# ----------------------------------------------------------------------------

def prep_conv1x1(w_oihw):
    cout, cin, kh, kw = w_oihw.shape
    assert kh == 1 and kw == 1
    w_std = wstd_pallas(w_oihw.reshape(cout, cin))
    return jnp.transpose(w_std, (1, 0)).astype(ACT_DTYPE)            # (Cin, Cout)


def prep_convkxk(w_oihw):
    cout, cin, kh, kw = w_oihw.shape
    w_std = wstd_pallas(w_oihw.reshape(cout, cin * kh * kw))
    w_std = w_std.reshape(cout, cin, kh, kw)
    mat = jnp.transpose(w_std, (2, 3, 1, 0)).reshape(kh * kw, cin, cout)
    return mat.astype(ACT_DTYPE)                                      # (taps, Cin, Cout)


def prepare_unit(p):
    q = {'stride': p['stride'],
         'conv1_w': prep_conv1x1(p['conv1_w']),
         'conv2_w': prep_convkxk(p['conv2_w']),
         'conv3_w': prep_conv1x1(p['conv3_w']),
         'gn1_g': p['gn1_g'], 'gn1_b': p['gn1_b'],
         'gn2_g': p['gn2_g'], 'gn2_b': p['gn2_b'],
         'gn3_g': p['gn3_g'], 'gn3_b': p['gn3_b']}
    if 'down_w' in p:
        q['down_w'] = prep_conv1x1(p['down_w'])
        q['gnp_g'], q['gnp_b'] = p['gnp_g'], p['gnp_b']
    return q


# ----------------------------------------------------------------------------
# PreActBottleneck forward (channels-last (N, H*W, C) bf16 rows between layers)
# ----------------------------------------------------------------------------

def _subsample_rows(x, h, w, stride):
    """Stride-s spatial subsampling of a rows-format activation (stride
    handling for the 1x1 downsample; identity when stride == 1)."""
    if stride == 1:
        return x, h, w
    n, _, c = x.shape
    x4 = x.reshape(n, h, w, c)[:, ::stride, ::stride, :]
    ho, wo = x4.shape[1], x4.shape[2]
    return x4.reshape(n, ho * wo, c), ho, wo


def preact_bottleneck(x, h, w, p):
    """PreActBottleneck.forward on a (N, H*W, Cin) bf16 activation.

      residual = gn_proj(downsample(x))   (if stride != 1 or cin != cout)
      y = relu(gn1(conv1(x)))             <- one fused pallas_call
      y = relu(gn2(conv2(y)))             <- one fused pallas_call
      y = relu(gn3(conv3(y)) + residual)  <- one fused pallas_call

    Returns (y (N, Ho*Wo, Cout) bf16, Ho, Wo).
    """
    stride = p['stride']
    if 'down_w' in p:
        cout = p['down_w'].shape[1]
        xd, _, _ = _subsample_rows(x, h, w, stride)
        residual = conv1x1_gn(xd, p['down_w'], p['gnp_g'], p['gnp_b'],
                              groups=cout, eps=1e-5, relu=False)
    else:
        residual = x

    y = conv1x1_gn(x, p['conv1_w'], p['gn1_g'], p['gn1_b'],
                   groups=32, eps=1e-6, relu=True)
    y, ho, wo = conv3x3_gn(y, p['conv2_w'], p['gn2_g'], p['gn2_b'],
                           h=h, w=w, stride=stride, padding=1,
                           groups=32, eps=1e-6, relu=True)
    y = conv1x1_gn(y, p['conv3_w'], p['gn3_g'], p['gn3_b'],
                   groups=32, eps=1e-6, relu=True, residual=residual)
    return y, ho, wo


# ----------------------------------------------------------------------------
# Deterministic parameter init (shapes as in the PyTorch module)
# ----------------------------------------------------------------------------

def init_unit_params(key, cin, cout, cmid, stride):
    kit = iter(jax.random.split(key, 16))

    def conv_w(co, ci, k):
        return 0.1 * jax.random.normal(next(kit), (co, ci, k, k), jnp.float32)

    def gn(cc):
        g = 1.0 + 0.1 * jax.random.normal(next(kit), (cc,), jnp.float32)
        b = 0.1 * jax.random.normal(next(kit), (cc,), jnp.float32)
        return g, b

    p = {'stride': stride,
         'conv1_w': conv_w(cmid, cin, 1),
         'conv2_w': conv_w(cmid, cmid, 3),
         'conv3_w': conv_w(cout, cmid, 1)}
    p['gn1_g'], p['gn1_b'] = gn(cmid)
    p['gn2_g'], p['gn2_b'] = gn(cmid)
    p['gn3_g'], p['gn3_b'] = gn(cout)
    if stride != 1 or cin != cout:
        p['down_w'] = conv_w(cout, cin, 1)
        p['gnp_g'], p['gnp_b'] = gn(cout)
    return p


# ----------------------------------------------------------------------------
# Pure-JAX f32 reference (mirrors the PyTorch module exactly)
# ----------------------------------------------------------------------------

def _ref_std_conv(x, w, stride, padding):
    m = jnp.mean(w, axis=(1, 2, 3), keepdims=True)
    v = jnp.var(w, axis=(1, 2, 3), keepdims=True)
    ws = (w - m) / jnp.sqrt(v + 1e-5)
    return jax.lax.conv_general_dilated(
        x, ws, (stride, stride), [(padding, padding), (padding, padding)],
        dimension_numbers=('NCHW', 'OIHW', 'NCHW'))


def _ref_group_norm(x, gamma, beta, groups, eps):
    n, c, h, w = x.shape
    xg = x.reshape(n, groups, -1)
    mean = jnp.mean(xg, axis=-1, keepdims=True)
    var = jnp.var(xg, axis=-1, keepdims=True)
    xg = (xg - mean) * jax.lax.rsqrt(var + eps)
    return (xg.reshape(n, c, h, w) * gamma.reshape(1, c, 1, 1)
            + beta.reshape(1, c, 1, 1))


def ref_preact_bottleneck(x, p):
    residual = x
    if 'down_w' in p:
        residual = _ref_std_conv(x, p['down_w'], p['stride'], 0)
        residual = _ref_group_norm(residual, p['gnp_g'], p['gnp_b'],
                                   residual.shape[1], 1e-5)
    y = jax.nn.relu(_ref_group_norm(
        _ref_std_conv(x, p['conv1_w'], 1, 0), p['gn1_g'], p['gn1_b'], 32, 1e-6))
    y = jax.nn.relu(_ref_group_norm(
        _ref_std_conv(y, p['conv2_w'], p['stride'], 1),
        p['gn2_g'], p['gn2_b'], 32, 1e-6))
    y = _ref_group_norm(
        _ref_std_conv(y, p['conv3_w'], 1, 0), p['gn3_g'], p['gn3_b'], 32, 1e-6)
    return jax.nn.relu(residual + y)


if __name__ == "__main__":
    key = jax.random.PRNGKey(0)
    k0, k1, kx = jax.random.split(key, 3)

    # Two stacked PreActBottleneck units, shapes as seen inside ResNetV2:
    #   unit0: cin=64 -> cout=128, cmid=32, stride=2 (downsample + gn_proj)
    #   unit1: cin=128 -> cout=128, cmid=32, stride=1 (identity residual)
    p0 = init_unit_params(k0, cin=64, cout=128, cmid=32, stride=2)
    p1 = init_unit_params(k1, cin=128, cout=128, cmid=32, stride=1)
    x = jax.random.normal(kx, (2, 64, 16, 16), jnp.float32)   # NCHW like torch

    # Weight standardization hoisted out of the forward (runs once).
    q0 = prepare_unit(p0)
    q1 = prepare_unit(p1)

    @jax.jit
    def forward(x_nchw):
        n, c, h, w = x_nchw.shape
        xr = jnp.transpose(x_nchw, (0, 2, 3, 1)).reshape(n, h * w, c)
        xr = xr.astype(ACT_DTYPE)
        y, h, w = preact_bottleneck(xr, h, w, q0)
        y, h, w = preact_bottleneck(y, h, w, q1)
        cout = y.shape[-1]
        y = y.reshape(n, h, w, cout).astype(jnp.float32)
        return jnp.transpose(y, (0, 3, 1, 2))                 # NCHW out

    out = jax.block_until_ready(forward(x))
    assert out.shape == (2, 128, 8, 8), out.shape
    assert bool(jnp.isfinite(out).all())

    # Validate against the f32 reference (bf16 inter-kernel activations with
    # f32 accumulation -> tolerance-based check rather than exact match).
    ref = ref_preact_bottleneck(ref_preact_bottleneck(x, p0), p1)
    err = float(jnp.max(jnp.abs(out - ref)))
    assert err < 0.3, err

    print("KERNEL_OK")
</pallas_src>

<mosaic_0001>
module attributes {stable_mosaic.version = 11 : i64} {
  func.func @_wstd_kernel(%arg0: i32, %arg1: memref<32x64xf32, #tpu.memory_space<vmem>>, %arg2: memref<32x64xf32, #tpu.memory_space<vmem>>) attributes {dimension_semantics = [#tpu.dimension_semantics<arbitrary>], iteration_bounds = array<i64: 1>, scalar_prefetch = 0 : i64, scratch_operands = 0 : i64, tpu.core_type = #tpu.core_type<tc>, window_params = [{pipeline_mode = #tpu.pipeline_mode<synchronous>, transform_indices = @transform_0, window_bounds = array<i64: 32, 64>}, {pipeline_mode = #tpu.pipeline_mode<synchronous>, transform_indices = @transform_1, window_bounds = array<i64: 32, 64>}]} {
    %c0 = arith.constant 0 : index
    %c0_0 = arith.constant 0 : index
    %0 = vector.load %arg1[%c0, %c0_0] : memref<32x64xf32, #tpu.memory_space<vmem>>, vector<32x64xf32>
    %cst = arith.constant dense<0.000000e+00> : vector<32xf32>
    %1 = vector.multi_reduction <add>, %0, %cst [1] : vector<32x64xf32> to vector<32xf32>
    %2 = vector.shape_cast %1 : vector<32xf32> to vector<32x1xf32>
    %cst_1 = arith.constant 6.400000e+01 : f32
    %3 = vector.broadcast %cst_1 : f32 to vector<32x1xf32>
    %4 = arith.divf %2, %3 : vector<32x1xf32>
    %5 = vector.broadcast %4 : vector<32x1xf32> to vector<32x64xf32>
    %6 = arith.subf %0, %5 : vector<32x64xf32>
    %7 = arith.mulf %6, %6 : vector<32x64xf32>
    %cst_2 = arith.constant dense<0.000000e+00> : vector<32xf32>
    %8 = vector.multi_reduction <add>, %7, %cst_2 [1] : vector<32x64xf32> to vector<32xf32>
    %9 = vector.shape_cast %8 : vector<32xf32> to vector<32x1xf32>
    %cst_3 = arith.constant 6.400000e+01 : f32
    %10 = vector.broadcast %cst_3 : f32 to vector<32x1xf32>
    %11 = arith.divf %9, %10 : vector<32x1xf32>
    %cst_4 = arith.constant 9.99999974E-6 : f32
    %12 = vector.broadcast %cst_4 : f32 to vector<32x1xf32>
    %13 = arith.addf %11, %12 : vector<32x1xf32>
    %14 = math.rsqrt %13 : vector<32x1xf32>
    %15 = vector.broadcast %14 : vector<32x1xf32> to vector<32x64xf32>
    %16 = arith.mulf %6, %15 : vector<32x64xf32>
    %c0_5 = arith.constant 0 : index
    %c0_6 = arith.constant 0 : index
    %17 = vector.load %arg2[%c0_5, %c0_6] : memref<32x64xf32, #tpu.memory_space<vmem>>, vector<32x64xf32>
    tpu.vector_store %arg2[%c0_5, %c0_6], %16 {strides = array<i32>} : memref<32x64xf32, #tpu.memory_space<vmem>>, vector<32x64xf32>,
    return
  }
  func.func @transform_0(%arg0: i32) -> (i32, i32) {
    %c0_i32 = arith.constant 0 : i32
    %c0_i32_0 = arith.constant 0 : i32
    %c0_i32_1 = arith.constant 0 : i32
    return %c0_i32, %c0_i32_0 : i32, i32
  }
  func.func @transform_1(%arg0: i32) -> (i32, i32) {
    %c0_i32 = arith.constant 0 : i32
    %c0_i32_0 = arith.constant 0 : i32
    %c0_i32_1 = arith.constant 0 : i32
    return %c0_i32, %c0_i32_0 : i32, i32
  }
}

</mosaic_0001>

<bundles_post_ra>
// kernel: tpu_custom_call.1
= control target key start
LH: loop header
LB: loop body
LE: loop exit
PB: predicated region body
PF: predicated region fallthrough
CT: control target
= control target key end

     0   :  { %6 = vsyncpa [#allocation3], 0  ;;  %s196_s0 = inlined_call_operand.hbm [shape: f32[32,64], index: 0, kind: input, shape index: {}]   ;;  %s197_s1 = inlined_call_operand.hbm [shape: f32[32,64], index: 1, kind: output, shape index: {}]  }
   0x1   :  { %7 = vsyncpa [#allocation4], 0  ;;  %s158_s6 = smov [#allocation2]  }
   0x2   :  { %s13_s7 = sshll.u32 %s158_s6, 4  ;;  %s14_s7 = int_to_ptr.vmem [resolvable:$true] %s13_s7 }
   0x3   :  { %s122_s8 = scalar_lea.vmem %s14_s7, 512  ;;  %p127_p1 = scmp.lt.s32.totalorder %s14_s7, %s14_s7 }
   0x4   :  { %p123_p0 = scmp.ne.s32.totalorder %s14_s7, %s122_s8  ;;  %p128_p2 = scmp.lt.s32.totalorder %s122_s8, %s122_s8 }
   0x6   :  { %p129_p3 = por %p128_p2, %p127_p1 }
   0x8   :  { %p130_p4 = pnand %p129_p3, %p123_p0 }
   0xa   :  { %133 = shalt.err (!%p130_p4)
}
   0xb   :  { %s159_s9 = smov 128   ;;  %s160_s10 = smov 8  }
   0xc   :  { %19 = dma.hbm_to_vmem [thread:$0]  %s196_s0, 512, %s14_s7, [#allocation3], %s159_s9, %s159_s9, %s160_s10  }
   0xd   :  { %154 = dma.done.wait [#allocation3], 512  }
   0xe   :  { %155 = vsyncadd [#allocation3], 4294966784  ;;  %vm27_vm0 = vcmask 523264   ;;  %v23_v0 = vld [vmem:[#allocation2] sm:$0xff]  ;;  %v25_v1 = vld [vmem:[#allocation2 + $0x10] sm:$0xff]  ;;  %s161_s0 = smov [#allocation5]  }
   0xf   :  { %v24_v2 = vld [vmem:[#allocation2 + $0x8] sm:$0xff]  ;;  %v28_v3 = vsel %vm27_vm0, %v23_v0, 0.0  ;;  %v34_v4 = vsel %vm27_vm0, %v25_v1, 0.0  ;;  %v26_v5 = vld [vmem:[#allocation2 + $0x18] sm:$0xff]  ;;  %s90_s13 = sshll.u32 %s161_s0, 4  ;;  %s91_s13 = int_to_ptr.vmem [resolvable:$true] %s90_s13 }
  0x10   :  { %29 = vadd.xlane.f32.xlu0 %v28_v3  ;;  %35 = vadd.xlane.f32.xlu1 %v34_v4  ;;  %v31_v6 = vsel %vm27_vm0, %v24_v2, 0.0  ;;  %v37_v7 = vsel %vm27_vm0, %v26_v5, 0.0  ;;  %s134_s14 = scalar_lea.vmem %s91_s13, 512  ;;  %p139_p6 = scmp.lt.s32.totalorder %s91_s13, %s91_s13 }
  0x11   :  { %p135_p5 = scmp.ne.s32.totalorder %s91_s13, %s134_s14  ;;  %p140_p7 = scmp.lt.s32.totalorder %s134_s14, %s134_s14 }
  0x13   :  { %p141_p8 = por %p140_p7, %p139_p6 }
  0x14   :  { %32 = vadd.xlane.f32.xlu0 %v31_v6  ;;  %38 = vadd.xlane.f32.xlu1 %v37_v7 }
  0x15   :  { %p142_p9 = pnand %p141_p8, %p135_p5 }
  0x99   :  { %v30_v8 = vpop.xlane.xlu0 %29  ;;  %v36_v9 = vpop.xlane.xlu1 %35 }
  0x9a   :  { %v41_v10 = vmul.f32 0.015625, %v30_v8  ;;  %v43_v11 = vmul.f32 0.015625, %v36_v9 }
  0x9c   :  { %v45_v12 = vsub.f32 %v23_v0, %v41_v10  ;;  %v47_v13 = vsub.f32 %v25_v1, %v43_v11 }
  0x9d   :  { %v33_v14 = vpop.xlane.xlu0 %32  ;;  %v39_v15 = vpop.xlane.xlu1 %38 }
  0x9e   :  { %v42_v16 = vmul.f32 0.015625, %v33_v14  ;;  %v44_v17 = vmul.f32 0.015625, %v39_v15  ;;  %v49_v18 = vmul.f32 %v45_v12, %v45_v12  ;;  %v51_v19 = vmul.f32 %v47_v13, %v47_v13 }
  0xa0   :  { %v46_v20 = vsub.f32 %v24_v2, %v42_v16  ;;  %v48_v21 = vsub.f32 %v26_v5, %v44_v17  ;;  %v53_v22 = vsel %vm27_vm0, %v49_v18, 0.0  ;;  %v59_v23 = vsel %vm27_vm0, %v51_v19, 0.0 }
  0xa1   :  { %54 = vadd.xlane.f32.xlu0 %v53_v22 }
  0xa2   :  { %v50_v24 = vmul.f32 %v46_v20, %v46_v20  ;;  %v52_v25 = vmul.f32 %v48_v21, %v48_v21 }
  0xa4   :  { %v56_v26 = vsel %vm27_vm0, %v50_v24, 0.0  ;;  %v62_v27 = vsel %vm27_vm0, %v52_v25, 0.0 }
  0xa5   :  { %60 = vadd.xlane.f32.xlu0 %v59_v23  ;;  %57 = vadd.xlane.f32.xlu1 %v56_v26 }
  0xa9   :  { %63 = vadd.xlane.f32.xlu1 %v62_v27 }
 0x12a   :  { %v55_v28 = vpop.xlane.xlu0 %54 }
 0x12b   :  { %v65_v29 = vmul.f32 0.015625, %v55_v28 }
 0x12d   :  { %v69_v30 = vadd.f32 1e-05, %v65_v29 }
 0x12e   :  { %v58_v31 = vpop.xlane.xlu1 %57  ;;  %v61_v32 = vpop.xlane.xlu0 %60 }
 0x12f   :  { %106 = vrsqrt.f32 %v69_v30  ;;  %v66_v33 = vmul.f32 0.015625, %v58_v31  ;;  %v67_v34 = vmul.f32 0.015625, %v61_v32 }
 0x131   :  { %v70_v35 = vadd.f32 1e-05, %v66_v33  ;;  %v71_v36 = vadd.f32 1e-05, %v67_v34 }
 0x132   :  { %v64_v37 = vpop.xlane.xlu1 %63 }
 0x133   :  { %108 = vrsqrt.f32 %v70_v35  ;;  %v68_v38 = vmul.f32 0.015625, %v64_v37 }
 0x134   :  { %110 = vrsqrt.f32 %v71_v36 }
 0x135   :  { %v72_v39 = vadd.f32 1e-05, %v68_v38 }
 0x137   :  { %112 = vrsqrt.f32 %v72_v39 }
 0x13c   :  { %v107_v40 = vpop.eup %106 }
 0x13d   :  { %v77_v41 = vmul.f32 %v107_v40, %v45_v12 }
 0x13f   :  { %81 = vst.msk [vmem:[#allocation5] sm:$0xff] %vm27_vm0, %v77_v41 }
 0x140   :  { %v109_v42 = vpop.eup %108 }
 0x141   :  { %v111_v43 = vpop.eup %110  ;;  %v78_v44 = vmul.f32 %v109_v42, %v46_v20 }
 0x142   :  { %v79_v45 = vmul.f32 %v111_v43, %v47_v13 }
 0x143   :  { %82 = vst.msk [vmem:[#allocation5 + $0x8] sm:$0xff] %vm27_vm0, %v78_v44 }
 0x144   :  { %v113_v46 = vpop.eup %112  ;;  %83 = vst.msk [vmem:[#allocation5 + $0x10] sm:$0xff] %vm27_vm0, %v79_v45 }
 0x145   :  { %v80_v47 = vmul.f32 %v113_v46, %v48_v21 }
 0x147   :  { %84 = vst.msk [vmem:[#allocation5 + $0x18] sm:$0xff] %vm27_vm0, %v80_v47 }
 0x148   :  { %145 = shalt.err (!%p142_p9)
}
 0x149   :  { %96 = dma.vmem_to_hbm [thread:$0]  %s91_s13, 512, %s197_s1, [#allocation4], %s159_s9, %s159_s9, %s160_s10  }
 0x14a   :  { %156 = dma.done.wait [#allocation4], 512  }
 0x14b   :  { %157 = vsyncadd [#allocation4], 4294966784 }
 0x14c   :  { %100 = vsyncpa [#allocation3], 1 }
 0x14d   :  { %101 = vsyncpa [#allocation4], 1 }

</bundles_post_ra>
